<compile_context>
chip_gen: v7x
topology: tpu7x:2x2x1
jax: 0.10.0
libtpu: 0.0.40
codegen_flags: <defaults>
</compile_context>

<pallas_src>
import jax
import jax.numpy as jnp
from jax.experimental import pallas as pl
from jax.experimental.pallas import tpu as pltpu


_LANES = 512                       # lane-dense slab width (multiple of 128)
_MAX_ROW_TILE = 512                # (512, 512) f32 tile = 1 MiB per buffer
_VMEM_LIMIT_BYTES = 32 * 1024 * 1024


def _identity_kernel(x_ref, o_ref):
    # Minimal body: the BlockSpec DMAs do the HBM<->VMEM movement; a single
    # full-tile VMEM copy is all that remains (keeps v5e's single vst slot
    # from becoming the bottleneck).
    o_ref[...] = x_ref[...]


def _fused_identity_slab(slab):
    """One pallas_call over a lane-dense (rows, _LANES) slab; output aliased
    to the input so no additional HBM buffer is allocated."""
    rows, cols = slab.shape
    if rows <= _MAX_ROW_TILE:
        row_tile = rows            # full-extent block: legal for any row count
    else:
        row_tile = _MAX_ROW_TILE   # multiple of 8; Pallas masks the ragged tail
    grid = (pl.cdiv(rows, row_tile),)
    return pl.pallas_call(
        _identity_kernel,
        out_shape=jax.ShapeDtypeStruct((rows, cols), slab.dtype),
        grid_spec=pltpu.PrefetchScalarGridSpec(
            num_scalar_prefetch=0,
            grid=grid,
            in_specs=[pl.BlockSpec((row_tile, cols), lambda i: (i, 0))],
            out_specs=pl.BlockSpec((row_tile, cols), lambda i: (i, 0)),
        ),
        compiler_params=pltpu.CompilerParams(
            dimension_semantics=("parallel",),   # lets v7x shard rows over 2 TCs
            vmem_limit_bytes=_VMEM_LIMIT_BYTES,  # explicit cap, v7x-safe
        ),
        input_output_aliases={0: 0},             # output aliases input buffer
    )(slab)


def _pallas_roundtrip_leaves(leaves):
    """Route a list of array leaves through ONE fused Pallas identity call per
    dtype (instead of one call per leaf) and return the reconstructed leaves."""
    out = [None] * len(leaves)
    by_dtype = {}
    for idx, leaf in enumerate(leaves):
        arr = jnp.asarray(leaf)
        by_dtype.setdefault(arr.dtype, []).append((idx, arr))

    for dtype, items in by_dtype.items():
        flats = [a.reshape(-1) for _, a in items]
        sizes = [f.size for f in flats]
        total = sum(sizes)
        padded = max(_LANES, ((total + _LANES - 1) // _LANES) * _LANES)
        if padded > total:
            flats = flats + [jnp.zeros((padded - total,), dtype)]
        slab = jnp.concatenate(flats).reshape(-1, _LANES)
        slab = _fused_identity_slab(slab).reshape(-1)
        off = 0
        for (idx, arr), size in zip(items, sizes):
            out[idx] = slab[off:off + size].reshape(arr.shape)
            off += size
    return out


class ModuleCorefLinkerDisabled:
    """JAX/Pallas counterpart of the disabled coref-linker module."""

    def __init__(self):
        self.enabled = False  # the module defines no parameters

    def forward(self, all_spans, filtered_spans, sequence_lengths, linker,
                materialize_with_pallas=False):
        # Reference semantics: return (all_spans, filtered_spans, None).
        if not materialize_with_pallas:
            # Fast path (default): pure pass-through — zero HBM traffic,
            # zero kernel launches.  Exactly matches the PyTorch reference.
            return (all_spans, filtered_spans, None)

        # Opt-in Pallas path: fuse every array leaf of both pytrees into a
        # single lane-dense, input/output-aliased identity kernel per dtype.
        # TODO(synk): the pack/unpack (concatenate/slice) around the kernel is
        # plain XLA data movement; it exists only to exercise the Pallas path.
        a_leaves, a_def = jax.tree_util.tree_flatten(all_spans)
        f_leaves, f_def = jax.tree_util.tree_flatten(filtered_spans)
        roundtripped = _pallas_roundtrip_leaves(a_leaves + f_leaves)
        all_out = jax.tree_util.tree_unflatten(a_def, roundtripped[:len(a_leaves)])
        filt_out = jax.tree_util.tree_unflatten(f_def, roundtripped[len(a_leaves):])
        # `sequence_lengths` and `linker` are unused by the disabled module.
        return (all_out, filt_out, None)

    def __call__(self, *args, **kwargs):
        return self.forward(*args, **kwargs)

    def log_stats(self, dataset_name, predict, tb_logger, step_nr):
        pass


if __name__ == "__main__":
    key = jax.random.PRNGKey(0)
    k1, k2, k3, k4 = jax.random.split(key, 4)

    batch, num_spans, top_spans, hidden = 2, 16, 8, 32

    all_spans = {
        "span_vecs": jax.random.normal(k1, (batch, num_spans, hidden), jnp.float32),
        "span_scores": jax.random.normal(k2, (batch, num_spans, 1), jnp.float32),
    }
    filtered_spans = {
        "span_vecs": jax.random.normal(k3, (batch, top_spans, hidden), jnp.float32),
        "span_scores": jax.random.normal(k4, (batch, top_spans, 1), jnp.float32),
    }
    sequence_lengths = jnp.array([num_spans, num_spans - 3], dtype=jnp.int32)
    linker = None  # disabled module never touches it

    module = ModuleCorefLinkerDisabled()

    # 1) Default (optimized) path: untouched pass-through, no kernel launches.
    out_all, out_filtered, out_linker = module(
        all_spans, filtered_spans, sequence_lengths, linker
    )
    assert out_linker is None
    assert out_all is all_spans and out_filtered is filtered_spans

    # 2) Opt-in Pallas path: run the fused identity kernel once and verify it
    #    is bit-exact against the reference inputs.
    p_all, p_filtered, p_linker = module.forward(
        all_spans, filtered_spans, sequence_lengths, linker,
        materialize_with_pallas=True,
    )
    jax.block_until_ready(p_all)
    jax.block_until_ready(p_filtered)

    assert p_linker is None
    for ref, got in zip(
        jax.tree_util.tree_leaves(all_spans), jax.tree_util.tree_leaves(p_all)
    ):
        assert ref.shape == got.shape and ref.dtype == got.dtype
        assert bool(jnp.all(ref == got))
    for ref, got in zip(
        jax.tree_util.tree_leaves(filtered_spans),
        jax.tree_util.tree_leaves(p_filtered),
    ):
        assert ref.shape == got.shape and ref.dtype == got.dtype
        assert bool(jnp.all(ref == got))

    print("KERNEL_OK")
</pallas_src>

<mosaic_0001>
module attributes {stable_mosaic.version = 11 : i64} {
  func.func @_identity_kernel(%arg0: i32, %arg1: memref<4x512xf32, #tpu.memory_space<vmem>>, %arg2: memref<4x512xf32, #tpu.memory_space<vmem>>) attributes {dimension_semantics = [#tpu.dimension_semantics<parallel>], iteration_bounds = array<i64: 1>, scalar_prefetch = 0 : i64, scratch_operands = 0 : i64, tpu.core_type = #tpu.core_type<tc>, window_params = [{transform_indices = @transform_0, window_bounds = array<i64: 4, 512>}, {transform_indices = @transform_1, window_bounds = array<i64: 4, 512>}]} {
    %c0 = arith.constant 0 : index
    %c0_0 = arith.constant 0 : index
    %0 = vector.load %arg1[%c0, %c0_0] : memref<4x512xf32, #tpu.memory_space<vmem>>, vector<4x512xf32>
    %c0_1 = arith.constant 0 : index
    %c0_2 = arith.constant 0 : index
    %1 = vector.load %arg2[%c0_1, %c0_2] : memref<4x512xf32, #tpu.memory_space<vmem>>, vector<4x512xf32>
    tpu.vector_store %arg2[%c0_1, %c0_2], %0 {strides = array<i32>} : memref<4x512xf32, #tpu.memory_space<vmem>>, vector<4x512xf32>,
    return
  }
  func.func @transform_0(%arg0: i32) -> (i32, i32) {
    %c0_i32 = arith.constant 0 : i32
    %c0_i32_0 = arith.constant 0 : i32
    return %arg0, %c0_i32 : i32, i32
  }
  func.func @transform_1(%arg0: i32) -> (i32, i32) {
    %c0_i32 = arith.constant 0 : i32
    %c0_i32_0 = arith.constant 0 : i32
    return %arg0, %c0_i32 : i32, i32
  }
}

</mosaic_0001>

<bundles_post_ra>
// kernel: tpu_custom_call.1
= control target key start
LH: loop header
LB: loop body
LE: loop exit
PB: predicated region body
PF: predicated region fallthrough
CT: control target
= control target key end

     0   :  { %6 = vsyncpa [#allocation3], 0  ;;  %s126_s0 = inlined_call_operand.hbm [shape: f32[4,512], index: 0, kind: input, shape index: {}, may-alias: {0,1}]   ;;  %s127_s1 = inlined_call_operand.hbm [shape: f32[4,512], index: 1, kind: output, shape index: {}, may-alias: {0,1}]  }
   0x1   :  { %7 = vsyncpa [#allocation4], 0  ;;  %s90_s6 = smov [#allocation2]   ;;  %s42_s10 = scalar_lea.hbm %s126_s0, 256 }
   0x2   :  { %s14_s7 = sshll.u32 %s90_s6, 4  ;;  %p43_p0 = scmp.ne.s32.totalorder %s126_s0, %s42_s10  ;;  %s15_s7 = int_to_ptr.vmem [resolvable:$true] %s14_s7 }
   0x3   :  { %p46_p1 = scmp.lt.u32.totalorder %s42_s10, %s126_s0 }
   0x5   :  { %p48_p2 = pnand %p46_p1, %p43_p0 }
   0x7   :  { %51 = shalt.err (!%p48_p2)
}
   0x8   :  { %s52_s15 = scalar_lea.vmem %s15_s7, 256  ;;  %p57_p4 = scmp.lt.s32.totalorder %s15_s7, %s15_s7 }
   0x9   :  { %p53_p3 = scmp.ne.s32.totalorder %s15_s7, %s52_s15  ;;  %p58_p5 = scmp.lt.s32.totalorder %s52_s15, %s52_s15 }
   0xb   :  { %p59_p6 = por %p58_p5, %p57_p4 }
   0xd   :  { %p60_p7 = pnand %p59_p6, %p53_p3 }
   0xf   :  { %63 = shalt.err (!%p60_p7)
}
  0x10   :  { %17 = dma.hbm_to_vmem [thread:$0]  %s126_s0, 256, %s15_s7, [#allocation3]  }
  0x11   :  { %86 = dma.done.wait [#allocation3], 256  }
  0x12   :  { %87 = vsyncadd [#allocation3], 4294967040  ;;  %s91_s18 = smov [#allocation5]   ;;  %v21_v0 = vld [vmem:[#allocation2] sm:$0xff]  ;;  %v22_v1 = vld [vmem:[#allocation2 + $0x8] sm:$0xff] }
  0x13   :  { %s31_s19 = sshll.u32 %s91_s18, 4  ;;  %23 = vst [vmem:[#allocation5] sm:$0xff] %v21_v0  ;;  %24 = vst [vmem:[#allocation5 + $0x8] sm:$0xff] %v22_v1  ;;  %s32_s19 = int_to_ptr.vmem [resolvable:$true] %s31_s19 }
  0x14   :  { %s64_s20 = scalar_lea.vmem %s32_s19, 256  ;;  %p69_p9 = scmp.lt.s32.totalorder %s32_s19, %s32_s19 }
  0x15   :  { %p65_p8 = scmp.ne.s32.totalorder %s32_s19, %s64_s20  ;;  %p70_p10 = scmp.lt.s32.totalorder %s64_s20, %s64_s20 }
  0x17   :  { %p71_p11 = por %p70_p10, %p69_p9 }
  0x19   :  { %p72_p12 = pnand %p71_p11, %p65_p8 }
  0x1b   :  { %75 = shalt.err (!%p72_p12)
}
  0x1c   :  { %s76_s0 = scalar_lea.hbm %s127_s1, 256 }
  0x1d   :  { %p77_p13 = scmp.ne.s32.totalorder %s127_s1, %s76_s0  ;;  %p80_p0 = scmp.lt.u32.totalorder %s76_s0, %s127_s1 }
  0x1f   :  { %p82_p1 = pnand %p80_p0, %p77_p13 }
  0x21   :  { %85 = shalt.err (!%p82_p1)
}
  0x22   :  { %34 = dma.vmem_to_hbm [thread:$0]  %s32_s19, 256, %s127_s1, [#allocation4]  }
  0x23   :  { %88 = dma.done.wait [#allocation4], 256  }
  0x24   :  { %89 = vsyncadd [#allocation4], 4294967040 }
  0x25   :  { %38 = vsyncpa [#allocation3], 1 }
  0x26   :  { %39 = vsyncpa [#allocation4], 1 }

</bundles_post_ra>
